<compile_context>
chip_gen: v7x
topology: tpu7x:2x2x1
jax: 0.10.0
libtpu: 0.0.40
codegen_flags: <defaults>
</compile_context>

<pallas_src>
import functools

import jax
import jax.numpy as jnp
from jax import lax
from jax.experimental import pallas as pl
from jax.experimental.pallas import tpu as pltpu


_UNROLL = 4                           # gather-loop unroll factor (tile_n % 4 == 0 always)
_VMEM_LIMIT = 32 * 1024 * 1024        # explicit scoped-VMEM limit (safe on v5e/v6e/v7x)
_DMA_TILE_BUDGET = 20 * 1024 * 1024   # budget for gather slabs + anchor double-buffer


def _round_up(x, m):
    return (x + m - 1) // m * m


def _sublane(dtype):
    # native sublane tile per dtype (f32: 8, bf16: 16, int8/fp8: 32)
    return {4: 8, 2: 16, 1: 32}.get(jnp.dtype(dtype).itemsize, 8)


def _eps_lane_term(eps, d_real, d_pad):
    # eps is only added on real (unpadded) feature lanes; padded lanes are zero in
    # both anchors and gathered rows, so they must not contribute eps^2.
    if d_real == d_pad:
        return jnp.float32(eps)          # no iota/where needed
    lane = lax.broadcasted_iota(jnp.int32, (1, d_pad), 1)
    return jnp.where(lane < d_real, jnp.float32(eps), jnp.float32(0.0))


def _hinge_sum(a, gathered, i, *, margin, eps, n_real, d_real, tile_n):
    """a: (tile_n, d_pad) anchors. gathered: (2*tile_n, d_pad) = [pos rows ; neg rows]."""
    d_pad = a.shape[-1]
    eps_term = _eps_lane_term(eps, d_real, d_pad)
    # Single VPU/XLU pass over the merged slab, then slice dp/dn.
    aa = jnp.concatenate([a, a], axis=0)                              # (2*tile_n, d_pad)
    diff = aa - gathered + eps_term
    dist = jnp.sqrt(jnp.sum(diff * diff, axis=-1, keepdims=True))     # (2*tile_n, 1)
    dp = dist[:tile_n]
    dn = dist[tile_n:]
    hinge = jnp.maximum(dp - dn + jnp.float32(margin), jnp.float32(0.0))
    # Mask rows that are padding of the last tile.
    row = i * tile_n + lax.broadcasted_iota(jnp.int32, (tile_n, 1), 0)
    hinge = jnp.where(row < n_real, hinge, jnp.float32(0.0))
    return jnp.sum(hinge)


# --------------------------------------------------------------------------------------
# Fast path: features resident in VMEM, gather via dynamic-row loads (no DMA machinery).
# --------------------------------------------------------------------------------------
def _triplet_vmem_kernel(pos_ref, neg_ref, feat_ref, out_ref, gbuf,
                         *, margin, eps, n_real, d_real, tile_n):
    i = pl.program_id(0)
    nt = pl.num_programs(0)
    base = pl.multiple_of(i * tile_n, 8)

    @pl.when(i == 0)
    def _():
        out_ref[0, 0] = 0.0

    # Gather positives into gbuf[0:tile_n) and negatives into gbuf[tile_n:2*tile_n)
    # with dynamic-row VMEM loads.  Padded rows gather row 0 (masked out later).
    @pl.loop(0, tile_n // _UNROLL)
    def _(rr):
        r0 = rr * _UNROLL
        for u in range(_UNROLL):          # static unroll: co-issue index loads / copies
            r = r0 + u
            gbuf[pl.ds(r, 1), :] = feat_ref[pl.ds(pos_ref[base + r], 1), :]
            gbuf[pl.ds(tile_n + r, 1), :] = feat_ref[pl.ds(neg_ref[base + r], 1), :]

    a = feat_ref[pl.ds(base, tile_n), :].astype(jnp.float32)
    g = gbuf[...].astype(jnp.float32)
    out_ref[0, 0] += _hinge_sum(a, g, i, margin=margin, eps=eps,
                                n_real=n_real, d_real=d_real, tile_n=tile_n)

    @pl.when(i == nt - 1)
    def _():
        # 'mean' over N then the extra /feat_num  ==  sum / N^2
        out_ref[0, 0] = out_ref[0, 0] * jnp.float32(1.0 / (n_real * n_real))


# --------------------------------------------------------------------------------------
# Large-N path: manual double-buffered HBM row-gather, merged [pos;neg] slab per slot.
# --------------------------------------------------------------------------------------
def _triplet_dma_kernel(pos_ref, neg_ref, anchor_ref, feat_hbm, out_ref,
                        gbuf, sem, *, margin, eps, n_real, d_real, tile_n):
    i = pl.program_id(0)
    nt = pl.num_programs(0)
    slot = jnp.bitwise_and(i, 1)

    def start_gather(tile, s):
        # 2*tile_n single-row HBM->VMEM copies, all on ONE semaphore channel so a single
        # slab-sized wait covers them.  Padded rows copy row 0 (results masked later).
        # TODO(synk): sort indices by piece_id in the wrapper so each tile's rows become
        # a few contiguous runs coalesced into a handful of large copies.
        base = tile * tile_n

        @pl.loop(0, tile_n // _UNROLL)
        def _(rr):
            r0 = rr * _UNROLL
            for u in range(_UNROLL):      # static unroll of descriptor issue
                r = r0 + u
                pltpu.make_async_copy(feat_hbm.at[pos_ref[base + r]],
                                      gbuf.at[s, r], sem.at[s]).start()
                pltpu.make_async_copy(feat_hbm.at[neg_ref[base + r]],
                                      gbuf.at[s, tile_n + r], sem.at[s]).start()

    # Prime the pipeline and init the scalar accumulator.
    @pl.when(i == 0)
    def _():
        out_ref[0, 0] = 0.0
        start_gather(0, 0)

    # Issue the NEXT tile's gather descriptors BEFORE blocking on this tile's: the other
    # slot was freed when step i-1's compute finished, and issuing early hides more of
    # the per-descriptor latency in the DMA queues.
    @pl.when(i + 1 < nt)
    def _():
        start_gather(i + 1, 1 - slot)

    # ONE wait per tile: a descriptor sized to the whole (2*tile_n, d_pad) slab. DMA
    # semaphores count bytes, and the total equals the sum of the row copies above.
    pltpu.make_async_copy(gbuf.at[slot], gbuf.at[slot], sem.at[slot]).wait()

    a = anchor_ref[...].astype(jnp.float32)
    g = gbuf[slot].astype(jnp.float32)
    out_ref[0, 0] += _hinge_sum(a, g, i, margin=margin, eps=eps,
                                n_real=n_real, d_real=d_real, tile_n=tile_n)

    @pl.when(i == nt - 1)
    def _():
        out_ref[0, 0] = out_ref[0, 0] * jnp.float32(1.0 / (n_real * n_real))


# --------------------------------------------------------------------------------------
# Wrapper
# --------------------------------------------------------------------------------------
def _triplet_loss_pallas(features, pos_idx, neg_idx, *, margin, eps,
                         max_tile_n=1024, vmem_fast_path_bytes=8 * 1024 * 1024):
    n, d = features.shape
    dtype = features.dtype
    itemsize = jnp.dtype(dtype).itemsize
    sub = _sublane(dtype)
    d_pad = max(128, _round_up(d, 128))

    # Fast path if the whole (padded) feature matrix fits comfortably in VMEM.
    fast = (_round_up(n, sub) * d_pad * itemsize) <= vmem_fast_path_bytes

    if fast:
        tile_n = min(_round_up(n, sub), 1024, _round_up(max_tile_n, sub))
    else:
        # 6 rows/anchor of VMEM: 2 slots x (pos+neg) gather slab + anchor double-buffer.
        max_rows = _DMA_TILE_BUDGET // (6 * d_pad * itemsize)
        max_rows = max(sub, max_rows // sub * sub)
        tile_n = min(_round_up(max_tile_n, sub), max_rows, _round_up(n, sub))
    tile_n = int(max(sub, tile_n // sub * sub))

    n_pad = _round_up(n, tile_n)
    num_tiles = n_pad // tile_n

    feat = jnp.zeros((n_pad, d_pad), dtype).at[:n, :d].set(features)
    pos = jnp.zeros((n_pad,), jnp.int32).at[:n].set(pos_idx.astype(jnp.int32))
    neg = jnp.zeros((n_pad,), jnp.int32).at[:n].set(neg_idx.astype(jnp.int32))

    common = dict(margin=float(margin), eps=float(eps),
                  n_real=int(n), d_real=int(d), tile_n=tile_n)
    out_shape = jax.ShapeDtypeStruct((1, 1), jnp.float32)
    smem_out = pl.BlockSpec(memory_space=pltpu.MemorySpace.SMEM)
    # TODO(synk): v7x dual-TC variant — per-tile partials + "parallel" axis + wrapper sum.
    cparams = pltpu.CompilerParams(dimension_semantics=("arbitrary",),
                                   vmem_limit_bytes=_VMEM_LIMIT)

    if fast:
        grid_spec = pltpu.PrefetchScalarGridSpec(
            num_scalar_prefetch=2,
            grid=(num_tiles,),
            in_specs=[
                # whole feature matrix resident in VMEM (constant block index)
                pl.BlockSpec((n_pad, d_pad), lambda i, p, ng: (0, 0)),
            ],
            out_specs=smem_out,
            scratch_shapes=[pltpu.VMEM((2 * tile_n, d_pad), dtype)],   # [pos ; neg]
        )
        kernel = functools.partial(_triplet_vmem_kernel, **common)
        out = pl.pallas_call(kernel, out_shape=out_shape, grid_spec=grid_spec,
                             compiler_params=cparams)(pos, neg, feat)
    else:
        grid_spec = pltpu.PrefetchScalarGridSpec(
            num_scalar_prefetch=2,
            grid=(num_tiles,),
            in_specs=[
                # anchor tile: auto-pipelined rectangular tile of features
                pl.BlockSpec((tile_n, d_pad), lambda i, p, ng: (i, 0)),
                # features left in HBM for the in-kernel row-gather DMAs
                pl.BlockSpec(memory_space=pl.ANY),
            ],
            out_specs=smem_out,
            scratch_shapes=[
                pltpu.VMEM((2, 2 * tile_n, d_pad), dtype),   # [pos;neg] slab x 2 slots
                pltpu.SemaphoreType.DMA((2,)),               # one channel per slot
            ],
        )
        kernel = functools.partial(_triplet_dma_kernel, **common)
        out = pl.pallas_call(kernel, out_shape=out_shape, grid_spec=grid_spec,
                             compiler_params=cparams)(pos, neg, feat, feat)
    return out[0, 0]


def sample_triplets(piece_ids, key):
    """Deterministic stand-in for Python random.sample: one random valid index per
    anchor for the positive pool (same id, anchor included, as in the original) and
    the negative pool (different id)."""
    n = piece_ids.shape[0]
    same = piece_ids[:, None] == piece_ids[None, :]
    # Single uniform field shared by positive & negative selection (masks are disjoint).
    # TODO(synk): for very large N, replace the O(N^2) mask/argmax sampling with a
    # sort-by-piece_id + per-group random-offset scheme.
    u = jax.random.uniform(key, (n, n))
    pos_idx = jnp.argmax(jnp.where(same, u, -1.0), axis=1)
    neg_idx = jnp.argmax(jnp.where(~same, u, -1.0), axis=1)
    return pos_idx, neg_idx


def triplet_adaptive_margin_loss(features, piece_ids, key, *, margin=1.0, eps=1e-6):
    """JAX/Pallas equivalent of TripletAdaptiveMarginLoss.forward."""
    pos_idx, neg_idx = sample_triplets(piece_ids, key)
    return _triplet_loss_pallas(features, pos_idx, neg_idx, margin=margin, eps=eps)


def _reference(features, pos_idx, neg_idx, *, margin=1.0, eps=1e-6):
    a = features
    p = features[pos_idx]
    n_ = features[neg_idx]
    dp = jnp.sqrt(jnp.sum((a - p + eps) ** 2, axis=-1))
    dn = jnp.sqrt(jnp.sum((a - n_ + eps) ** 2, axis=-1))
    loss = jnp.maximum(dp - dn + margin, 0.0)
    n = features.shape[0]
    return jnp.mean(loss) / n


if __name__ == "__main__":
    key = jax.random.PRNGKey(0)
    k_feat, k_sample, k_feat2, k_sample2 = jax.random.split(key, 4)

    # Small problem (exercises the VMEM-resident fast path).
    N, D = 8, 32
    features = jax.random.normal(k_feat, (N, D), dtype=jnp.float32)
    # Each id appears >= 2 times and there are >= 2 distinct ids, so positive and
    # negative pools are always non-empty (as the module assumes).
    piece_ids = jnp.array([0, 0, 1, 1, 2, 2, 3, 3], dtype=jnp.int32)

    loss = triplet_adaptive_margin_loss(features, piece_ids, k_sample)
    loss = jax.block_until_ready(loss)
    pos_idx, neg_idx = sample_triplets(piece_ids, k_sample)
    ref = _reference(features, pos_idx, neg_idx, margin=1.0, eps=1e-6)
    assert jnp.allclose(loss, ref, atol=1e-5, rtol=1e-5), (loss, ref)

    # Larger problem forced onto the manual double-buffered HBM-gather path
    # (exercises the DMA pipeline, slab wait, partial-tile masking and lane padding).
    N2, D2 = 80, 200
    features2 = jax.random.normal(k_feat2, (N2, D2), dtype=jnp.float32)
    piece_ids2 = (jnp.arange(N2) % 8).astype(jnp.int32)
    pos2, neg2 = sample_triplets(piece_ids2, k_sample2)
    loss2 = _triplet_loss_pallas(features2, pos2, neg2, margin=1.0, eps=1e-6,
                                 vmem_fast_path_bytes=0, max_tile_n=32)
    loss2 = jax.block_until_ready(loss2)
    ref2 = _reference(features2, pos2, neg2, margin=1.0, eps=1e-6)
    assert jnp.allclose(loss2, ref2, atol=1e-5, rtol=1e-4), (loss2, ref2)

    print("KERNEL_OK")
</pallas_src>

<mosaic_0001>
module attributes {stable_mosaic.version = 11 : i64} {
  func.func @_triplet_vmem_kernel(%arg0: i32, %arg1: memref<8xi32, #tpu.memory_space<smem>>, %arg2: memref<8xi32, #tpu.memory_space<smem>>, %arg3: memref<8x128xf32, #tpu.memory_space<vmem>>, %arg4: memref<1x1xf32, #tpu.memory_space<smem>>, %arg5: memref<16x128xf32, #tpu.memory_space<vmem>>) attributes {dimension_semantics = [#tpu.dimension_semantics<arbitrary>], iteration_bounds = array<i64: 1>, scalar_prefetch = 2 : i64, scratch_operands = 1 : i64, tpu.core_type = #tpu.core_type<tc>, window_params = [{pipeline_mode = #tpu.pipeline_mode<synchronous>, transform_indices = @transform_0, window_bounds = array<i64: 8, 128>}, {transform_indices = @transform_1, window_bounds = array<i64: 1, 1>}]} {
    %c8_i32 = arith.constant 8 : i32
    %0 = arith.muli %arg0, %c8_i32 : i32
    %1 = tpu.assume_multiple %0, 8 : i32
    %c0_i32 = arith.constant 0 : i32
    %2 = arith.cmpi eq, %arg0, %c0_i32 : i32
    %3 = arith.extui %2 : i1 to i32
    %c0_i32_0 = arith.constant 0 : i32
    %4 = arith.cmpi ne, %3, %c0_i32_0 : i32
    scf.if %4 {
      %cst_19 = arith.constant 0.000000e+00 : f32
      %c0_20 = arith.constant 0 : index
      %c0_21 = arith.constant 0 : index
      %48 = memref.load %arg4[%c0_20, %c0_21] : memref<1x1xf32, #tpu.memory_space<smem>>
      memref.store %cst_19, %arg4[%c0_20, %c0_21] : memref<1x1xf32, #tpu.memory_space<smem>>
    } else {
    }
    %c0_i32_1 = arith.constant 0 : i32
    %c2_i32 = arith.constant 2 : i32
    %5 = arith.addi %c0_i32_1, %c2_i32 : i32
    %c1_i32 = arith.constant 1 : i32
    scf.for %arg6 = %c0_i32_1 to %5 step %c1_i32  : i32 {
      %c1_i32_19 = arith.constant 1 : i32
      %48 = arith.muli %arg6, %c1_i32_19 : i32
      %c0_i32_20 = arith.constant 0 : i32
      %49 = arith.addi %c0_i32_20, %48 : i32
      %c4_i32 = arith.constant 4 : i32
      %50 = arith.muli %49, %c4_i32 : i32
      %c0_i32_21 = arith.constant 0 : i32
      %51 = arith.addi %50, %c0_i32_21 : i32
      %52 = arith.addi %1, %51 : i32
      %53 = arith.index_cast %52 : i32 to index
      %54 = memref.load %arg1[%53] : memref<8xi32, #tpu.memory_space<smem>>
      %55 = arith.index_cast %54 : i32 to index
      %c0_22 = arith.constant 0 : index
      %56 = vector.load %arg3[%55, %c0_22] : memref<8x128xf32, #tpu.memory_space<vmem>>, vector<1x128xf32>
      %57 = arith.index_cast %51 : i32 to index
      %c0_23 = arith.constant 0 : index
      %58 = vector.load %arg5[%57, %c0_23] : memref<16x128xf32, #tpu.memory_space<vmem>>, vector<1x128xf32>
      tpu.vector_store %arg5[%57, %c0_23], %56 {strides = array<i32>} : memref<16x128xf32, #tpu.memory_space<vmem>>, vector<1x128xf32>,
      %59 = arith.addi %1, %51 : i32
      %60 = arith.index_cast %59 : i32 to index
      %61 = memref.load %arg2[%60] : memref<8xi32, #tpu.memory_space<smem>>
      %62 = arith.index_cast %61 : i32 to index
      %c0_24 = arith.constant 0 : index
      %63 = vector.load %arg3[%62, %c0_24] : memref<8x128xf32, #tpu.memory_space<vmem>>, vector<1x128xf32>
      %c8_i32_25 = arith.constant 8 : i32
      %64 = arith.addi %c8_i32_25, %51 : i32
      %65 = arith.index_cast %64 : i32 to index
      %c0_26 = arith.constant 0 : index
      %66 = vector.load %arg5[%65, %c0_26] : memref<16x128xf32, #tpu.memory_space<vmem>>, vector<1x128xf32>
      tpu.vector_store %arg5[%65, %c0_26], %63 {strides = array<i32>} : memref<16x128xf32, #tpu.memory_space<vmem>>, vector<1x128xf32>,
      %c1_i32_27 = arith.constant 1 : i32
      %67 = arith.addi %50, %c1_i32_27 : i32
      %68 = arith.addi %1, %67 : i32
      %69 = arith.index_cast %68 : i32 to index
      %70 = memref.load %arg1[%69] : memref<8xi32, #tpu.memory_space<smem>>
      %71 = arith.index_cast %70 : i32 to index
      %c0_28 = arith.constant 0 : index
      %72 = vector.load %arg3[%71, %c0_28] : memref<8x128xf32, #tpu.memory_space<vmem>>, vector<1x128xf32>
      %73 = arith.index_cast %67 : i32 to index
      %c0_29 = arith.constant 0 : index
      %74 = vector.load %arg5[%73, %c0_29] : memref<16x128xf32, #tpu.memory_space<vmem>>, vector<1x128xf32>
      tpu.vector_store %arg5[%73, %c0_29], %72 {strides = array<i32>} : memref<16x128xf32, #tpu.memory_space<vmem>>, vector<1x128xf32>,
      %75 = arith.addi %1, %67 : i32
      %76 = arith.index_cast %75 : i32 to index
      %77 = memref.load %arg2[%76] : memref<8xi32, #tpu.memory_space<smem>>
      %78 = arith.index_cast %77 : i32 to index
      %c0_30 = arith.constant 0 : index
      %79 = vector.load %arg3[%78, %c0_30] : memref<8x128xf32, #tpu.memory_space<vmem>>, vector<1x128xf32>
      %c8_i32_31 = arith.constant 8 : i32
      %80 = arith.addi %c8_i32_31, %67 : i32
      %81 = arith.index_cast %80 : i32 to index
      %c0_32 = arith.constant 0 : index
      %82 = vector.load %arg5[%81, %c0_32] : memref<16x128xf32, #tpu.memory_space<vmem>>, vector<1x128xf32>
      tpu.vector_store %arg5[%81, %c0_32], %79 {strides = array<i32>} : memref<16x128xf32, #tpu.memory_space<vmem>>, vector<1x128xf32>,
      %c2_i32_33 = arith.constant 2 : i32
      %83 = arith.addi %50, %c2_i32_33 : i32
      %84 = arith.addi %1, %83 : i32
      %85 = arith.index_cast %84 : i32 to index
      %86 = memref.load %arg1[%85] : memref<8xi32, #tpu.memory_space<smem>>
      %87 = arith.index_cast %86 : i32 to index
      %c0_34 = arith.constant 0 : index
      %88 = vector.load %arg3[%87, %c0_34] : memref<8x128xf32, #tpu.memory_space<vmem>>, vector<1x128xf32>
      %89 = arith.index_cast %83 : i32 to index
      %c0_35 = arith.constant 0 : index
      %90 = vector.load %arg5[%89, %c0_35] : memref<16x128xf32, #tpu.memory_space<vmem>>, vector<1x128xf32>
      tpu.vector_store %arg5[%89, %c0_35], %88 {strides = array<i32>} : memref<16x128xf32, #tpu.memory_space<vmem>>, vector<1x128xf32>,
      %91 = arith.addi %1, %83 : i32
      %92 = arith.index_cast %91 : i32 to index
      %93 = memref.load %arg2[%92] : memref<8xi32, #tpu.memory_space<smem>>
      %94 = arith.index_cast %93 : i32 to index
      %c0_36 = arith.constant 0 : index
      %95 = vector.load %arg3[%94, %c0_36] : memref<8x128xf32, #tpu.memory_space<vmem>>, vector<1x128xf32>
      %c8_i32_37 = arith.constant 8 : i32
      %96 = arith.addi %c8_i32_37, %83 : i32
      %97 = arith.index_cast %96 : i32 to index
      %c0_38 = arith.constant 0 : index
      %98 = vector.load %arg5[%97, %c0_38] : memref<16x128xf32, #tpu.memory_space<vmem>>, vector<1x128xf32>
      tpu.vector_store %arg5[%97, %c0_38], %95 {strides = array<i32>} : memref<16x128xf32, #tpu.memory_space<vmem>>, vector<1x128xf32>,
      %c3_i32 = arith.constant 3 : i32
      %99 = arith.addi %50, %c3_i32 : i32
      %100 = arith.addi %1, %99 : i32
      %101 = arith.index_cast %100 : i32 to index
      %102 = memref.load %arg1[%101] : memref<8xi32, #tpu.memory_space<smem>>
      %103 = arith.index_cast %102 : i32 to index
      %c0_39 = arith.constant 0 : index
      %104 = vector.load %arg3[%103, %c0_39] : memref<8x128xf32, #tpu.memory_space<vmem>>, vector<1x128xf32>
      %105 = arith.index_cast %99 : i32 to index
      %c0_40 = arith.constant 0 : index
      %106 = vector.load %arg5[%105, %c0_40] : memref<16x128xf32, #tpu.memory_space<vmem>>, vector<1x128xf32>
      tpu.vector_store %arg5[%105, %c0_40], %104 {strides = array<i32>} : memref<16x128xf32, #tpu.memory_space<vmem>>, vector<1x128xf32>,
      %107 = arith.addi %1, %99 : i32
      %108 = arith.index_cast %107 : i32 to index
      %109 = memref.load %arg2[%108] : memref<8xi32, #tpu.memory_space<smem>>
      %110 = arith.index_cast %109 : i32 to index
      %c0_41 = arith.constant 0 : index
      %111 = vector.load %arg3[%110, %c0_41] : memref<8x128xf32, #tpu.memory_space<vmem>>, vector<1x128xf32>
      %c8_i32_42 = arith.constant 8 : i32
      %112 = arith.addi %c8_i32_42, %99 : i32
      %113 = arith.index_cast %112 : i32 to index
      %c0_43 = arith.constant 0 : index
      %114 = vector.load %arg5[%113, %c0_43] : memref<16x128xf32, #tpu.memory_space<vmem>>, vector<1x128xf32>
      tpu.vector_store %arg5[%113, %c0_43], %111 {strides = array<i32>} : memref<16x128xf32, #tpu.memory_space<vmem>>, vector<1x128xf32>,
    }
    %c2_i32_2 = arith.constant 2 : i32
    %6 = arith.index_cast %1 : i32 to index
    %c0 = arith.constant 0 : index
    %7 = vector.load %arg3[%6, %c0] : memref<8x128xf32, #tpu.memory_space<vmem>>, vector<8x128xf32>
    %c0_3 = arith.constant 0 : index
    %c0_4 = arith.constant 0 : index
    %8 = vector.load %arg5[%c0_3, %c0_4] : memref<16x128xf32, #tpu.memory_space<vmem>>, vector<16x128xf32>
    %c0_5 = arith.constant 0 : index
    %c0_6 = arith.constant 0 : index
    %9 = memref.load %arg4[%c0_5, %c0_6] : memref<1x1xf32, #tpu.memory_space<smem>>
    %10 = tpu.iota {dimensions = array<i32: 1>} : vector<1x128xi32>
    %c32_i32 = arith.constant 32 : i32
    %11 = vector.broadcast %c32_i32 : i32 to vector<1x128xi32>
    %12 = arith.cmpi slt, %10, %11 : vector<1x128xi32>
    %cst = arith.constant 9.99999997E-7 : f32
    %cst_7 = arith.constant 0.000000e+00 : f32
    %13 = vector.broadcast %cst : f32 to vector<1x128xf32>
    %14 = vector.broadcast %cst_7 : f32 to vector<1x128xf32>
    %15 = arith.select %12, %13, %14 : vector<1x128xi1>, vector<1x128xf32>
    %16 = tpu.concatenate %7, %7 in 0 : vector<8x128xf32>, vector<8x128xf32> -> vector<16x128xf32>
    %17 = arith.subf %16, %8 : vector<16x128xf32>
    %18 = vector.broadcast %15 : vector<1x128xf32> to vector<16x128xf32>
    %19 = arith.addf %17, %18 : vector<16x128xf32>
    %20 = arith.mulf %19, %19 : vector<16x128xf32>
    %cst_8 = arith.constant dense<0.000000e+00> : vector<16xf32>
    %21 = vector.multi_reduction <add>, %20, %cst_8 [1] : vector<16x128xf32> to vector<16xf32>
    %22 = vector.shape_cast %21 : vector<16xf32> to vector<16x1xf32>
    %23 = math.sqrt %22 : vector<16x1xf32>
    %24 = vector.extract_strided_slice %23 {offsets = [0, 0], sizes = [8, 1], strides = [1, 1]} : vector<16x1xf32> to vector<8x1xf32>
    %25 = vector.extract_strided_slice %23 {offsets = [8, 0], sizes = [8, 1], strides = [1, 1]} : vector<16x1xf32> to vector<8x1xf32>
    %26 = arith.subf %24, %25 : vector<8x1xf32>
    %cst_9 = arith.constant 1.000000e+00 : f32
    %27 = vector.broadcast %cst_9 : f32 to vector<8x1xf32>
    %28 = arith.addf %26, %27 : vector<8x1xf32>
    %cst_10 = arith.constant 0.000000e+00 : f32
    %29 = vector.broadcast %cst_10 : f32 to vector<8x1xf32>
    %30 = arith.maximumf %28, %29 : vector<8x1xf32>
    %c8_i32_11 = arith.constant 8 : i32
    %31 = arith.muli %arg0, %c8_i32_11 : i32
    %32 = tpu.iota {dimensions = array<i32: 0>} : vector<8x1xi32>
    %33 = vector.broadcast %31 : i32 to vector<8x1xi32>
    %34 = arith.addi %33, %32 : vector<8x1xi32>
    %c8_i32_12 = arith.constant 8 : i32
    %35 = vector.broadcast %c8_i32_12 : i32 to vector<8x1xi32>
    %36 = arith.cmpi slt, %34, %35 : vector<8x1xi32>
    %cst_13 = arith.constant 0.000000e+00 : f32
    %37 = vector.broadcast %cst_13 : f32 to vector<8x1xf32>
    %38 = arith.select %36, %30, %37 : vector<8x1xi1>, vector<8x1xf32>
    %39 = vector.shape_cast %38 : vector<8x1xf32> to vector<1x8x1xf32>
    %cst_14 = arith.constant dense<0.000000e+00> : vector<1xf32>
    %40 = vector.multi_reduction <add>, %39, %cst_14 [1, 2] : vector<1x8x1xf32> to vector<1xf32>
    %41 = vector.shape_cast %40 : vector<1xf32> to vector<1x1x1xf32>
    %42 = vector.extract %41[0, 0, 0] : f32 from vector<1x1x1xf32>
    %43 = arith.addf %9, %42 : f32
    %c0_15 = arith.constant 0 : index
    %c0_16 = arith.constant 0 : index
    %44 = memref.load %arg4[%c0_15, %c0_16] : memref<1x1xf32, #tpu.memory_space<smem>>
    memref.store %43, %arg4[%c0_15, %c0_16] : memref<1x1xf32, #tpu.memory_space<smem>>
    %c0_i32_17 = arith.constant 0 : i32
    %45 = arith.cmpi eq, %arg0, %c0_i32_17 : i32
    %46 = arith.extui %45 : i1 to i32
    %c0_i32_18 = arith.constant 0 : i32
    %47 = arith.cmpi ne, %46, %c0_i32_18 : i32
    scf.if %47 {
      %c0_19 = arith.constant 0 : index
      %c0_20 = arith.constant 0 : index
      %48 = memref.load %arg4[%c0_19, %c0_20] : memref<1x1xf32, #tpu.memory_space<smem>>
      %cst_21 = arith.constant 1.562500e-02 : f32
      %49 = arith.mulf %48, %cst_21 : f32
      %c0_22 = arith.constant 0 : index
      %c0_23 = arith.constant 0 : index
      %50 = memref.load %arg4[%c0_22, %c0_23] : memref<1x1xf32, #tpu.memory_space<smem>>
      memref.store %49, %arg4[%c0_22, %c0_23] : memref<1x1xf32, #tpu.memory_space<smem>>
    } else {
    }
    return
  }
  func.func @transform_0(%arg0: i32, %arg1: memref<8xi32, #tpu.memory_space<smem>>, %arg2: memref<8xi32, #tpu.memory_space<smem>>) -> (i32, i32) {
    %c0_i32 = arith.constant 0 : i32
    %c0_i32_0 = arith.constant 0 : i32
    %c0_i32_1 = arith.constant 0 : i32
    return %c0_i32, %c0_i32_0 : i32, i32
  }
  func.func @transform_1(%arg0: i32, %arg1: memref<8xi32, #tpu.memory_space<smem>>, %arg2: memref<8xi32, #tpu.memory_space<smem>>) -> (i32, i32) {
    %c0_i32 = arith.constant 0 : i32
    %c0_i32_0 = arith.constant 0 : i32
    %c0_i32_1 = arith.constant 0 : i32
    return %c0_i32, %c0_i32_0 : i32, i32
  }
}

</mosaic_0001>

<bundles_post_ra>
// kernel: tpu_custom_call.1
= control target key start
LH: loop header
LB: loop body
LE: loop exit
PB: predicated region body
PF: predicated region fallthrough
CT: control target
= control target key end

     0   :  { %s385_s0 = inlined_call_operand.hbm [shape: s32[8], index: 0, kind: input, shape index: {}]   ;;  %s386_s2 = inlined_call_operand.hbm [shape: f32[8,128], index: 2, kind: input, shape index: {}]   ;;  %s387_s3 = inlined_call_operand.hbm [shape: f32[1,1], index: 3, kind: output, shape index: {}]   ;;  %s388_s1 = inlined_call_operand.vmem [shape: s32[8], index: 1, kind: input, shape index: {}]  }
   0x1   :  { %s243_s14 = scalar_lea.hbm %s385_s0, 16 }
   0x2   :  { %p244_p0 = scmp.ne.s32.totalorder %s385_s0, %s243_s14  ;;  %p247_p1 = scmp.lt.u32.totalorder %s243_s14, %s385_s0 }
   0x4   :  { %p249_p2 = pnand %p247_p1, %p244_p0 }
   0x6   :  { %252 = shalt.err (!%p249_p2)  }
   0x7   :  { %s311_s19 = smov [#allocation4]   ;;  %s10_s24 = sshll.u32 %s388_s1, 4  ;;  %s11_s24 = int_to_ptr.vmem [resolvable:$true] %s10_s24 }
   0x8   :  { %9 = dma.hbm_to_smem %s385_s0, 16, %s311_s19, [#allocation3] }
   0x9   :  { %s253_s25 = scalar_lea.vmem %s11_s24, 16  ;;  %p258_p4 = scmp.lt.s32.totalorder %s11_s24, %s11_s24 }
   0xa   :  { %p254_p3 = scmp.ne.s32.totalorder %s11_s24, %s253_s25  ;;  %p259_p5 = scmp.lt.s32.totalorder %s253_s25, %s253_s25 }
   0xc   :  { %p260_p6 = por %p259_p5, %p258_p4 }
   0xe   :  { %p261_p7 = pnand %p260_p6, %p254_p3 }
  0x10   :  { %264 = shalt.err (!%p261_p7)  }
  0x11   :  { %s312_s26 = smov [#allocation5]  }
  0x12   :  { %13 = dma.vmem_to_smem %s11_s24, 16, %s312_s26, [#allocation3] }
  0x13   :  { %301 = dma.done.wait [#allocation3], 32 }
  0x14   :  { %302 = vsyncadd [#allocation3], 4294967264 }
  0x15   :  { %15 = sfence }
  0x16   :  { %16 = vsyncpa [#allocation7], 0 }
  0x17   :  { %17 = vsyncpa [#allocation8], 0  ;;  %s313_s0 = smov [#allocation6]   ;;  %s265_s29 = scalar_lea.hbm %s386_s2, 128 }
  0x18   :  { %s24_s27 = sshll.u32 %s313_s0, 4  ;;  %p266_p8 = scmp.ne.s32.totalorder %s386_s2, %s265_s29  ;;  %s25_s27 = int_to_ptr.vmem [resolvable:$true] %s24_s27 }
  0x19   :  { %p269_p9 = scmp.lt.u32.totalorder %s265_s29, %s386_s2 }
  0x1b   :  { %p271_p10 = pnand %p269_p9, %p266_p8 }
  0x1d   :  { %274 = shalt.err (!%p271_p10)
}
  0x1e   :  { %s275_s7 = scalar_lea.vmem %s25_s27, 128  ;;  %p280_p12 = scmp.lt.s32.totalorder %s25_s27, %s25_s27 }
  0x1f   :  { %p276_p11 = scmp.ne.s32.totalorder %s25_s27, %s275_s7  ;;  %p281_p13 = scmp.lt.s32.totalorder %s275_s7, %s275_s7 }
  0x21   :  { %p282_p0 = por %p281_p13, %p280_p12 }
  0x23   :  { %p283_p1 = pnand %p282_p0, %p276_p11 }
  0x25   :  { %286 = shalt.err (!%p283_p1)
}
  0x26   :  { %27 = dma.hbm_to_vmem [thread:$0]  %s386_s2, 128, %s25_s27, [#allocation7]  }
  0x27   :  { %303 = dma.done.wait [#allocation7], 128  }
  0x28   :  { %304 = vsyncadd [#allocation7], 4294967168  ;;  %s314_s10 = smov 0.0   ;;  %s364_s11 = smov 0  }
  0x29   :  { %37 = sst [smem:[#allocation9]] %s314_s10 }
  0x2a LB: > { %s208_s12 = sshll.u32 %s309_s11, 2  ;;  %s43_s11 = sadd.s32 1, %s309_s11   ;;  %s309_s11 = sphi %s364_s11, %s43_s11  }
  0x2b   : > { %s46_s13 = sld [smem:[#allocation4 + %s208_s12]]  ;;  %s57_s15 = sadd.s32 1, %s208_s12 }
  0x2c   : > { %s51_s14 = sld [smem:[#allocation5 + %s208_s12]]  ;;  %s70_s18 = sadd.s32 2, %s208_s12 }
  0x2d   : > { %s59_s16 = sld [smem:[#allocation4 + %s57_s15]]  ;;  %s83_s2 = sadd.s32 3, %s208_s12 }
  0x2e   : > { %s64_s17 = sld [smem:[#allocation5 + %s57_s15]]  ;;  %s49_s24 = scalar_lea.vmem [#allocation2], %s208_s12 }
  0x2f   : > { %s72_s19 = sld [smem:[#allocation4 + %s70_s18]]  ;;  %p40_p2 = scmp.ge.s32.totalorder %s43_s11, 2  }
  0x30   : > { %s77_s20 = sld [smem:[#allocation5 + %s70_s18]]  ;;  %v97_v8 = vld [vmem:[#allocation6] sm:$0xff] (%p40_p2)  ;;  %v101_v10 = vlaneseq (%p40_p2)  ;;  %v315_v15 = vmov (%p40_p2), 0.0   ;;  %vm138_vm5 = vcmask (%p40_p2), 7168   ;;  %s287_s9 = scalar_lea.hbm (%p40_p2), %s387_s3, 16 }
  0x31   : > { %s85_s21 = sld [smem:[#allocation4 + %s83_s2]]  ;;  %s47_s23 = scalar_lea.vmem [#allocation6], %s46_s13 }
  0x32   : > { %s90_s22 = sld [smem:[#allocation5 + %s83_s2]]  ;;  %v48_v0 = vld [vmem:[%s47_s23] sm:$0x1]  ;;  %s52_s25 = scalar_lea.vmem [#allocation6], %s51_s14  ;;  %v102_v12 = vand.u32 (%p40_p2), 127, %v101_v10 }
  0x33   : > { %50 = vst [vmem:[%s49_s24] sm:$0x1] %v48_v0  ;;  %v53_v1 = vld [vmem:[%s52_s25] sm:$0x1]  ;;  %s60_s26 = scalar_lea.vmem [#allocation6], %s59_s16  ;;  %s100_s30 = sld [smem:[#allocation9]] (%p40_p2) }
  0x34   : > { %210 = vst [vmem:[%s49_s24 + $0x8] sm:$0x1] %v53_v1  ;;  %v61_v2 = vld [vmem:[%s60_s26] sm:$0x1]  ;;  %s65_s0 = scalar_lea.vmem [#allocation6], %s64_s17  ;;  %42 = sbr.rel (!%p40_p2) target bundleno = 42 (0x2a), region = 62 }
  0x35   : > { %v66_v3 = vld [vmem:[%s65_s0] sm:$0x1]  ;;  %212 = vst [vmem:[%s49_s24 + $0x1] sm:$0x1] %v61_v2  ;;  %s73_s27 = scalar_lea.vmem [#allocation6], %s72_s19  ;;  %vm103_vm0 = vcmp.lt.s32.totalorder (%p40_p2), %v102_v12, 32  ;;  %p288_p3 = scmp.ne.s32.totalorder (%p40_p2), %s387_s3, %s287_s9 }
  0x36   : > { %214 = vst [vmem:[%s49_s24 + $0x9] sm:$0x1] %v66_v3  ;;  %v74_v4 = vld [vmem:[%s73_s27] sm:$0x1]  ;;  %s78_s28 = scalar_lea.vmem [#allocation6], %s77_s20  ;;  %p291_p4 = scmp.lt.u32.totalorder (%p40_p2), %s287_s9, %s387_s3 }
  0x37   : > { %v79_v5 = vld [vmem:[%s78_s28] sm:$0x1]  ;;  %216 = vst [vmem:[%s49_s24 + $0x2] sm:$0x1] %v74_v4  ;;  %s86_s1 = scalar_lea.vmem [#allocation6], %s85_s21 }
  0x38   : > { %218 = vst [vmem:[%s49_s24 + $0xa] sm:$0x1] %v79_v5  ;;  %v87_v6 = vld [vmem:[%s86_s1] sm:$0x1]  ;;  %s91_s29 = scalar_lea.vmem [#allocation6], %s90_s22  ;;  %p293_p5 = pnand (%p40_p2), %p291_p4, %p288_p3 }
  0x39   : > { %v92_v7 = vld [vmem:[%s91_s29] sm:$0x1]  ;;  %220 = vst [vmem:[%s49_s24 + $0x3] sm:$0x1] %v87_v6  ;;  %v104_v16 = vsel (%p40_p2), %vm103_vm0, 1e-06, %v315_v15 }
  0x3a   : > { %222 = vst [vmem:[%s49_s24 + $0xb] sm:$0x1] %v92_v7 }
  0x41   :  { %v98_v9 = vld [vmem:[#allocation2] sm:$0xff]  ;;  %v99_v11 = vld [vmem:[#allocation2 + $0x8] sm:$0xff] }
  0x42   :  { %v105_v13 = vsub.f32 %v97_v8, %v98_v9  ;;  %v106_v14 = vsub.f32 %v97_v8, %v99_v11 }
  0x44   :  { %v107_v17 = vadd.f32 %v105_v13, %v104_v16  ;;  %v108_v18 = vadd.f32 %v106_v14, %v104_v16 }
  0x46   :  { %v109_v19 = vmul.f32 %v107_v17, %v107_v17  ;;  %v110_v20 = vmul.f32 %v108_v18, %v108_v18 }
  0x48   :  { %111 = vadd.xlane.f32.xlu0 %v109_v19 }
  0x4c   :  { %113 = vadd.xlane.f32.xlu0 %v110_v20 }
  0xd5   :  { %v112_v21 = vpop.xlane.xlu0 %111 }
  0xd6   :  { %239 = vrsqrt.f32 %v112_v21  ;;  %vm117_vm1 = vcmp.eq.f32.partialorder %v112_v21, inf  ;;  %v120_v28 = vand.u32 2147483648, %v112_v21  ;;  %vm119_vm3 = vcmp.eq.f32.partialorder %v112_v21, 0.0 }
  0xd9   :  { %v114_v22 = vpop.xlane.xlu0 %113 }
  0xda   :  { %241 = vrsqrt.f32 %v114_v22  ;;  %vm124_vm2 = vcmp.eq.f32.partialorder %v114_v22, inf  ;;  %v127_v29 = vand.u32 2147483648, %v114_v22  ;;  %vm126_vm4 = vcmp.eq.f32.partialorder %v114_v22, 0.0 }
  0xe0   :  { %v240_v23 = vpop.eup %239 }
  0xe1   :  { %v116_v24 = vmul.f32 %v240_v23, %v112_v21 }
  0xe3   :  { %v118_v27 = vsel %vm117_vm1, %v112_v21, %v116_v24 }
  0xe4   :  { %v242_v25 = vpop.eup %241  ;;  %v121_v31 = vsel %vm119_vm3, %v120_v28, %v118_v27 }
  0xe5   :  { %v123_v26 = vmul.f32 %v242_v25, %v114_v22 }
  0xe7   :  { %v125_v30 = vsel %vm124_vm2, %v114_v22, %v123_v26 }
  0xe8   :  { %v128_v32 = vsel %vm126_vm4, %v127_v29, %v125_v30 }
  0xe9   :  { %v129_v33 = vsub.f32 %v121_v31, %v128_v32 }
  0xeb   :  { %v130_v34 = vadd.f32 1.0, %v129_v33 }
  0xed   :  { %v131_v35 = vmax.f32 %v130_v34, 0.0 }
  0xef   :  { %v139_v36 = vsel %vm138_vm5, %v131_v35, 0.0 }
  0xf0   :  { %140 = vadd.xlane.f32.xlu1 %v139_v36 }
 0x17d   :  { %v141_v37 = vpop.xlane.xlu1 %140 }
 0x17e   :  { %v142_v38 = vrot.slane %v141_v37, 4 }
 0x180   :  { %v143_v39 = vadd.f32 %v142_v38, %v141_v37 }
 0x182   :  { %v144_v40 = vrot.slane %v143_v39, 2 }
 0x184   :  { %v145_v41 = vadd.f32 %v144_v40, %v143_v39 }
 0x186   :  { %v146_v42 = vrot.slane %v145_v41, 1 }
 0x188   :  { %v147_v43 = vadd.f32 %v146_v42, %v145_v41 }
 0x18a   :  { %223 = vpush %v147_v43 }
 0x1bb   :  { %s224_s4 = spop %223 }
 0x1bc   :  { %s149_s5 = sadd.f32 %s224_s4, %s100_s30 }
 0x1be   :  { %s156_s6 = smul.f32 0.015625, %s149_s5 }
 0x1c0   :  { %157 = sst [smem:[#allocation9]] %s156_s6 }
 0x1c1   :  { %296 = shalt.err (!%p293_p5)
}
 0x1c2   :  { %s316_s14 = smov [#allocation9]  }
 0x1c3   :  { %165 = dma.smem_to_hbm %s316_s14, 16, %s387_s3, [#allocation8]  }
 0x1c4   :  { %305 = dma.done.wait [#allocation8], 16  }
 0x1c5   :  { %306 = vsyncadd [#allocation8], 4294967280 }
 0x1c6   :  { %169 = sfence }
 0x1c7   :  { %170 = vsyncpa [#allocation7], 1 }
 0x1c8   :  { %171 = vsyncpa [#allocation8], 1 }

</bundles_post_ra>
